<compile_context>
chip_gen: v7x
topology: tpu7x:2x2x1
jax: 0.10.0
libtpu: 0.0.40
codegen_flags: <defaults>
</compile_context>

<pallas_src>
import functools
import math

import jax
import jax.numpy as jnp
from jax.experimental import pallas as pl
from jax.experimental.pallas import tpu as pltpu


def _mha_kernel(x_ref, wqT_ref, wkT_ref, wvT_ref, woT_ref, wpT_ref, bp_ref, o_ref,
                *, num_heads):
    Bb, T, E = x_ref.shape
    H = num_heads
    hd = E // H

    # Fold the Bb batch rows into the matmul M dimension: all projection matmuls
    # see a (Bb*T, E) x (E, E) problem.
    x2 = x_ref[...].reshape(Bb * T, E)

    # Weights are pre-transposed on the host (no in-kernel .T); the 1/sqrt(hd)
    # attention scale is already folded into wqT.
    q = jnp.dot(x2, wqT_ref[...], preferred_element_type=jnp.float32)  # (Bb*T, E)
    k = jnp.dot(x2, wkT_ref[...], preferred_element_type=jnp.float32)
    v = jnp.dot(x2, wvT_ref[...], preferred_element_type=jnp.float32)

    # Additive causal mask (position j > i disallowed), built once per grid step.
    row = jax.lax.broadcasted_iota(jnp.int32, (T, T), 0)
    col = jax.lax.broadcasted_iota(jnp.int32, (T, T), 1)
    mask_bias = jnp.where(col > row, jnp.float32(-1e30), jnp.float32(0.0))  # (T, T)

    outs = []
    for b in range(Bb):  # small static loop over the folded batch rows
        sl = slice(b * T, (b + 1) * T)
        # (T, E) -> (H, T, hd): heads become the leading batch dim of one batched
        # MXU contraction (no per-head python loop, no lane concatenate).
        qb = jnp.transpose(q[sl].reshape(T, H, hd), (1, 0, 2))
        kb = jnp.transpose(k[sl].reshape(T, H, hd), (1, 0, 2))
        vb = jnp.transpose(v[sl].reshape(T, H, hd), (1, 0, 2))

        s = jnp.einsum('hqd,hkd->hqk', qb, kb,
                       preferred_element_type=jnp.float32)          # (H, T, T)
        s = s + mask_bias                                           # broadcast over H

        m = jnp.max(s, axis=-1, keepdims=True)
        p = jnp.exp(s - m)
        p = p * pl.reciprocal(jnp.sum(p, axis=-1, keepdims=True), approx=True)

        ob = jnp.einsum('hqk,hkd->hqd', p, vb,
                        preferred_element_type=jnp.float32)         # (H, T, hd)
        outs.append(jnp.transpose(ob, (1, 0, 2)).reshape(T, E))     # (T, E)

    attn = outs[0] if Bb == 1 else jnp.concatenate(outs, axis=0)    # (Bb*T, E)

    # MultiheadAttention out_proj (no bias) followed by the extra proj Linear (bias).
    y = jnp.dot(attn, woT_ref[...], preferred_element_type=jnp.float32)
    y = jnp.dot(y, wpT_ref[...], preferred_element_type=jnp.float32) + bp_ref[...]

    o_ref[...] = y.reshape(Bb, T, E).astype(o_ref.dtype)


def _pick_block_b(B, T, target_rows=128):
    """Largest divisor of B such that block_b * T stays <= max(target_rows, T)."""
    best = 1
    for d in range(1, B + 1):
        if B % d == 0 and d * T <= max(target_rows, T):
            best = d
    return best


def multihead_attention(x, wq, wk, wv, wo, wp, bp, *, num_heads, block_b=None):
    """Causal MHA + out_proj + proj matching the PyTorch module's forward.

    Weights are taken in PyTorch Linear layout (out_features, in_features); they are
    pre-transposed on the host (and the 1/sqrt(head_dim) scale folded into Wq) so the
    kernel contains no transposes.
    """
    B, T, E = x.shape
    assert E % num_heads == 0
    hd = E // num_heads
    if block_b is None:
        block_b = _pick_block_b(B, T)
    assert B % block_b == 0

    scale = 1.0 / math.sqrt(hd)
    wqT = (wq * scale).T          # fold attention scale into the q projection
    wkT = wk.T
    wvT = wv.T
    woT = wo.T
    wpT = wp.T
    bp2 = bp.reshape(1, E)        # 2-D bias -> clean lane layout

    kernel = functools.partial(_mha_kernel, num_heads=num_heads)
    return pl.pallas_call(
        kernel,
        out_shape=jax.ShapeDtypeStruct((B, T, E), x.dtype),
        grid_spec=pltpu.PrefetchScalarGridSpec(
            num_scalar_prefetch=0,
            grid=(B // block_b,),
            in_specs=[
                pl.BlockSpec((block_b, T, E), lambda b: (b, 0, 0)),  # x
                pl.BlockSpec((E, E), lambda b: (0, 0)),              # Wq^T * scale
                pl.BlockSpec((E, E), lambda b: (0, 0)),              # Wk^T
                pl.BlockSpec((E, E), lambda b: (0, 0)),              # Wv^T
                pl.BlockSpec((E, E), lambda b: (0, 0)),              # out_proj.weight^T
                pl.BlockSpec((E, E), lambda b: (0, 0)),              # proj.weight^T
                pl.BlockSpec((1, E), lambda b: (0, 0)),              # proj.bias
            ],
            out_specs=pl.BlockSpec((block_b, T, E), lambda b: (b, 0, 0)),
        ),
        compiler_params=pltpu.CompilerParams(
            dimension_semantics=("parallel",)),
    )(x, wqT, wkT, wvT, woT, wpT, bp2)


def _reference(x, wq, wk, wv, wo, wp, bp, *, num_heads):
    """Pure-JAX reference replicating the PyTorch forward (dropout=0, no biases)."""
    B, T, E = x.shape
    hd = E // num_heads
    q = jnp.einsum('bte,fe->btf', x, wq).reshape(B, T, num_heads, hd).transpose(0, 2, 1, 3)
    k = jnp.einsum('bte,fe->btf', x, wk).reshape(B, T, num_heads, hd).transpose(0, 2, 1, 3)
    v = jnp.einsum('bte,fe->btf', x, wv).reshape(B, T, num_heads, hd).transpose(0, 2, 1, 3)
    s = jnp.einsum('bhtd,bhsd->bhts', q, k) / math.sqrt(hd)
    mask = jnp.triu(jnp.ones((T, T), bool), k=1)
    s = jnp.where(mask, -1e30, s)
    p = jax.nn.softmax(s, axis=-1)
    o = jnp.einsum('bhts,bhsd->bhtd', p, v).transpose(0, 2, 1, 3).reshape(B, T, E)
    o = jnp.einsum('bte,fe->btf', o, wo)
    return jnp.einsum('bte,fe->btf', o, wp) + bp


if __name__ == "__main__":
    # Small shapes consistent with the module: d_in = d_out = 32, 4 heads, seq = 8.
    B, T, E, H = 2, 8, 32, 4
    block_size = 16  # block_size >= num_tokens branch -> causal mask of size T

    key = jax.random.PRNGKey(0)
    kx, kqkv, ko, kp, kb = jax.random.split(key, 5)

    x = jax.random.normal(kx, (B, T, E), dtype=jnp.float32)

    # in_proj_weight (3E, E) split into q/k/v; deterministic init.
    in_proj = jax.random.normal(kqkv, (3 * E, E), dtype=jnp.float32) * 0.05
    wq, wk, wv = in_proj[:E], in_proj[E:2 * E], in_proj[2 * E:]
    wo = jax.random.normal(ko, (E, E), dtype=jnp.float32) * 0.05   # out_proj.weight
    wp = jax.random.normal(kp, (E, E), dtype=jnp.float32) * 0.05   # proj.weight
    bp = jax.random.normal(kb, (E,), dtype=jnp.float32) * 0.05     # proj.bias

    out = multihead_attention(x, wq, wk, wv, wo, wp, bp, num_heads=H)
    out = jax.block_until_ready(out)

    ref = _reference(x, wq, wk, wv, wo, wp, bp, num_heads=H)
    assert out.shape == (B, T, E)
    # Tolerance loosened slightly to accommodate pl.reciprocal(approx=True).
    assert jnp.allclose(out, ref, atol=2e-3, rtol=2e-3), "mismatch vs reference"

    print("KERNEL_OK")
</pallas_src>

<mosaic_0001>
module attributes {stable_mosaic.version = 11 : i64} {
  func.func @_mha_kernel(%arg0: i32, %arg1: memref<2x8x32xf32, #tpu.memory_space<vmem>>, %arg2: memref<32x32xf32, #tpu.memory_space<vmem>>, %arg3: memref<32x32xf32, #tpu.memory_space<vmem>>, %arg4: memref<32x32xf32, #tpu.memory_space<vmem>>, %arg5: memref<32x32xf32, #tpu.memory_space<vmem>>, %arg6: memref<32x32xf32, #tpu.memory_space<vmem>>, %arg7: memref<1x32xf32, #tpu.memory_space<vmem>>, %arg8: memref<2x8x32xf32, #tpu.memory_space<vmem>>) attributes {dimension_semantics = [#tpu.dimension_semantics<parallel>], iteration_bounds = array<i64: 1>, scalar_prefetch = 0 : i64, scratch_operands = 0 : i64, tpu.core_type = #tpu.core_type<tc>, window_params = [{transform_indices = @transform_0, window_bounds = array<i64: 2, 8, 32>}, {pipeline_mode = #tpu.pipeline_mode<synchronous>, transform_indices = @transform_1, window_bounds = array<i64: 32, 32>}, {pipeline_mode = #tpu.pipeline_mode<synchronous>, transform_indices = @transform_2, window_bounds = array<i64: 32, 32>}, {pipeline_mode = #tpu.pipeline_mode<synchronous>, transform_indices = @transform_3, window_bounds = array<i64: 32, 32>}, {pipeline_mode = #tpu.pipeline_mode<synchronous>, transform_indices = @transform_4, window_bounds = array<i64: 32, 32>}, {pipeline_mode = #tpu.pipeline_mode<synchronous>, transform_indices = @transform_5, window_bounds = array<i64: 32, 32>}, {pipeline_mode = #tpu.pipeline_mode<synchronous>, transform_indices = @transform_6, window_bounds = array<i64: 1, 32>}, {transform_indices = @transform_7, window_bounds = array<i64: 2, 8, 32>}]} {
    %c0 = arith.constant 0 : index
    %c0_0 = arith.constant 0 : index
    %c0_1 = arith.constant 0 : index
    %0 = vector.load %arg1[%c0, %c0_0, %c0_1] : memref<2x8x32xf32, #tpu.memory_space<vmem>>, vector<2x8x32xf32>
    %1 = vector.shape_cast %0 : vector<2x8x32xf32> to vector<16x32xf32>
    %c0_2 = arith.constant 0 : index
    %c0_3 = arith.constant 0 : index
    %2 = vector.load %arg2[%c0_2, %c0_3] : memref<32x32xf32, #tpu.memory_space<vmem>>, vector<32x32xf32>
    %cst = arith.constant dense<0.000000e+00> : vector<16x32xf32>
    %3 = tpu.matmul %1, %2, %cst {dimension_numbers = #tpu.dot_dimension_numbers<[1], [0], [0], [1], [0, 0, 1, 1], [], []>} : vector<16x32xf32>, vector<32x32xf32>, vector<16x32xf32> -> vector<16x32xf32>
    %c0_4 = arith.constant 0 : index
    %c0_5 = arith.constant 0 : index
    %4 = vector.load %arg3[%c0_4, %c0_5] : memref<32x32xf32, #tpu.memory_space<vmem>>, vector<32x32xf32>
    %cst_6 = arith.constant dense<0.000000e+00> : vector<16x32xf32>
    %5 = tpu.matmul %1, %4, %cst_6 {dimension_numbers = #tpu.dot_dimension_numbers<[1], [0], [0], [1], [0, 0, 1, 1], [], []>} : vector<16x32xf32>, vector<32x32xf32>, vector<16x32xf32> -> vector<16x32xf32>
    %c0_7 = arith.constant 0 : index
    %c0_8 = arith.constant 0 : index
    %6 = vector.load %arg4[%c0_7, %c0_8] : memref<32x32xf32, #tpu.memory_space<vmem>>, vector<32x32xf32>
    %cst_9 = arith.constant dense<0.000000e+00> : vector<16x32xf32>
    %7 = tpu.matmul %1, %6, %cst_9 {dimension_numbers = #tpu.dot_dimension_numbers<[1], [0], [0], [1], [0, 0, 1, 1], [], []>} : vector<16x32xf32>, vector<32x32xf32>, vector<16x32xf32> -> vector<16x32xf32>
    %8 = tpu.iota {dimensions = array<i32: 0>} : vector<8x8xi32>
    %9 = tpu.iota {dimensions = array<i32: 1>} : vector<8x8xi32>
    %10 = arith.cmpi sgt, %9, %8 : vector<8x8xi32>
    %cst_10 = arith.constant -1.000000e+30 : f32
    %cst_11 = arith.constant 0.000000e+00 : f32
    %11 = vector.broadcast %cst_10 : f32 to vector<8x8xf32>
    %12 = vector.broadcast %cst_11 : f32 to vector<8x8xf32>
    %13 = arith.select %10, %11, %12 : vector<8x8xi1>, vector<8x8xf32>
    %14 = vector.extract_strided_slice %3 {offsets = [0, 0], sizes = [8, 32], strides = [1, 1]} : vector<16x32xf32> to vector<8x32xf32>
    %15 = vector.shape_cast %14 : vector<8x32xf32> to vector<8x4x8xf32>
    %16 = tpu.transpose %15, [1, 0, 2] : vector<8x4x8xf32> -> vector<4x8x8xf32>
    %17 = vector.extract_strided_slice %5 {offsets = [0, 0], sizes = [8, 32], strides = [1, 1]} : vector<16x32xf32> to vector<8x32xf32>
    %18 = vector.shape_cast %17 : vector<8x32xf32> to vector<8x4x8xf32>
    %19 = tpu.transpose %18, [1, 0, 2] : vector<8x4x8xf32> -> vector<4x8x8xf32>
    %20 = vector.extract_strided_slice %7 {offsets = [0, 0], sizes = [8, 32], strides = [1, 1]} : vector<16x32xf32> to vector<8x32xf32>
    %21 = vector.shape_cast %20 : vector<8x32xf32> to vector<8x4x8xf32>
    %22 = tpu.transpose %21, [1, 0, 2] : vector<8x4x8xf32> -> vector<4x8x8xf32>
    "tpu.trace_start"() <{level = 10 : i32, message = "hqd,hkd->hqk"}> : () -> ()
    %cst_12 = arith.constant dense<0.000000e+00> : vector<4x8x8xf32>
    %23 = tpu.matmul %16, %19, %cst_12 {dimension_numbers = #tpu.dot_dimension_numbers<[2], [2], [1], [1], [0, 0, 0, 1, 1, 1], [0], [0]>} : vector<4x8x8xf32>, vector<4x8x8xf32>, vector<4x8x8xf32> -> vector<4x8x8xf32>
    "tpu.trace_stop"() : () -> ()
    %24 = vector.shape_cast %13 : vector<8x8xf32> to vector<1x8x8xf32>
    %25 = vector.broadcast %24 : vector<1x8x8xf32> to vector<4x8x8xf32>
    %26 = arith.addf %23, %25 : vector<4x8x8xf32>
    %cst_13 = arith.constant dense<0xFF800000> : vector<4x8xf32>
    %27 = vector.multi_reduction <maximumf>, %26, %cst_13 [2] : vector<4x8x8xf32> to vector<4x8xf32>
    %28 = vector.shape_cast %27 : vector<4x8xf32> to vector<4x8x1xf32>
    %29 = vector.broadcast %28 : vector<4x8x1xf32> to vector<4x8x8xf32>
    %30 = arith.subf %26, %29 : vector<4x8x8xf32>
    %31 = math.exp %30 : vector<4x8x8xf32>
    %cst_14 = arith.constant dense<0.000000e+00> : vector<4x8xf32>
    %32 = vector.multi_reduction <add>, %31, %cst_14 [2] : vector<4x8x8xf32> to vector<4x8xf32>
    %33 = vector.shape_cast %32 : vector<4x8xf32> to vector<4x8x1xf32>
    %34 = tpu.reciprocal %33 {approx = true} : vector<4x8x1xf32> -> vector<4x8x1xf32>
    %35 = vector.broadcast %34 : vector<4x8x1xf32> to vector<4x8x8xf32>
    %36 = arith.mulf %31, %35 : vector<4x8x8xf32>
    "tpu.trace_start"() <{level = 10 : i32, message = "hqk,hkd->hqd"}> : () -> ()
    %cst_15 = arith.constant dense<0.000000e+00> : vector<4x8x8xf32>
    %37 = tpu.matmul %36, %22, %cst_15 {dimension_numbers = #tpu.dot_dimension_numbers<[2], [1], [1], [2], [0, 0, 0, 1, 1, 2], [0], [0]>} : vector<4x8x8xf32>, vector<4x8x8xf32>, vector<4x8x8xf32> -> vector<4x8x8xf32>
    "tpu.trace_stop"() : () -> ()
    %38 = tpu.transpose %37, [1, 0, 2] : vector<4x8x8xf32> -> vector<8x4x8xf32>
    %39 = vector.shape_cast %38 : vector<8x4x8xf32> to vector<8x32xf32>
    %40 = vector.extract_strided_slice %3 {offsets = [8, 0], sizes = [8, 32], strides = [1, 1]} : vector<16x32xf32> to vector<8x32xf32>
    %41 = vector.shape_cast %40 : vector<8x32xf32> to vector<8x4x8xf32>
    %42 = tpu.transpose %41, [1, 0, 2] : vector<8x4x8xf32> -> vector<4x8x8xf32>
    %43 = vector.extract_strided_slice %5 {offsets = [8, 0], sizes = [8, 32], strides = [1, 1]} : vector<16x32xf32> to vector<8x32xf32>
    %44 = vector.shape_cast %43 : vector<8x32xf32> to vector<8x4x8xf32>
    %45 = tpu.transpose %44, [1, 0, 2] : vector<8x4x8xf32> -> vector<4x8x8xf32>
    %46 = vector.extract_strided_slice %7 {offsets = [8, 0], sizes = [8, 32], strides = [1, 1]} : vector<16x32xf32> to vector<8x32xf32>
    %47 = vector.shape_cast %46 : vector<8x32xf32> to vector<8x4x8xf32>
    %48 = tpu.transpose %47, [1, 0, 2] : vector<8x4x8xf32> -> vector<4x8x8xf32>
    "tpu.trace_start"() <{level = 10 : i32, message = "hqd,hkd->hqk"}> : () -> ()
    %cst_16 = arith.constant dense<0.000000e+00> : vector<4x8x8xf32>
    %49 = tpu.matmul %42, %45, %cst_16 {dimension_numbers = #tpu.dot_dimension_numbers<[2], [2], [1], [1], [0, 0, 0, 1, 1, 1], [0], [0]>} : vector<4x8x8xf32>, vector<4x8x8xf32>, vector<4x8x8xf32> -> vector<4x8x8xf32>
    "tpu.trace_stop"() : () -> ()
    %50 = vector.shape_cast %13 : vector<8x8xf32> to vector<1x8x8xf32>
    %51 = vector.broadcast %50 : vector<1x8x8xf32> to vector<4x8x8xf32>
    %52 = arith.addf %49, %51 : vector<4x8x8xf32>
    %cst_17 = arith.constant dense<0xFF800000> : vector<4x8xf32>
    %53 = vector.multi_reduction <maximumf>, %52, %cst_17 [2] : vector<4x8x8xf32> to vector<4x8xf32>
    %54 = vector.shape_cast %53 : vector<4x8xf32> to vector<4x8x1xf32>
    %55 = vector.broadcast %54 : vector<4x8x1xf32> to vector<4x8x8xf32>
    %56 = arith.subf %52, %55 : vector<4x8x8xf32>
    %57 = math.exp %56 : vector<4x8x8xf32>
    %cst_18 = arith.constant dense<0.000000e+00> : vector<4x8xf32>
    %58 = vector.multi_reduction <add>, %57, %cst_18 [2] : vector<4x8x8xf32> to vector<4x8xf32>
    %59 = vector.shape_cast %58 : vector<4x8xf32> to vector<4x8x1xf32>
    %60 = tpu.reciprocal %59 {approx = true} : vector<4x8x1xf32> -> vector<4x8x1xf32>
    %61 = vector.broadcast %60 : vector<4x8x1xf32> to vector<4x8x8xf32>
    %62 = arith.mulf %57, %61 : vector<4x8x8xf32>
    "tpu.trace_start"() <{level = 10 : i32, message = "hqk,hkd->hqd"}> : () -> ()
    %cst_19 = arith.constant dense<0.000000e+00> : vector<4x8x8xf32>
    %63 = tpu.matmul %62, %48, %cst_19 {dimension_numbers = #tpu.dot_dimension_numbers<[2], [1], [1], [2], [0, 0, 0, 1, 1, 2], [0], [0]>} : vector<4x8x8xf32>, vector<4x8x8xf32>, vector<4x8x8xf32> -> vector<4x8x8xf32>
    "tpu.trace_stop"() : () -> ()
    %64 = tpu.transpose %63, [1, 0, 2] : vector<4x8x8xf32> -> vector<8x4x8xf32>
    %65 = vector.shape_cast %64 : vector<8x4x8xf32> to vector<8x32xf32>
    %66 = tpu.concatenate %39, %65 in 0 : vector<8x32xf32>, vector<8x32xf32> -> vector<16x32xf32>
    %c0_20 = arith.constant 0 : index
    %c0_21 = arith.constant 0 : index
    %67 = vector.load %arg5[%c0_20, %c0_21] : memref<32x32xf32, #tpu.memory_space<vmem>>, vector<32x32xf32>
    %cst_22 = arith.constant dense<0.000000e+00> : vector<16x32xf32>
    %68 = tpu.matmul %66, %67, %cst_22 {dimension_numbers = #tpu.dot_dimension_numbers<[1], [0], [0], [1], [0, 0, 1, 1], [], []>} : vector<16x32xf32>, vector<32x32xf32>, vector<16x32xf32> -> vector<16x32xf32>
    %c0_23 = arith.constant 0 : index
    %c0_24 = arith.constant 0 : index
    %69 = vector.load %arg6[%c0_23, %c0_24] : memref<32x32xf32, #tpu.memory_space<vmem>>, vector<32x32xf32>
    %cst_25 = arith.constant dense<0.000000e+00> : vector<16x32xf32>
    %70 = tpu.matmul %68, %69, %cst_25 {dimension_numbers = #tpu.dot_dimension_numbers<[1], [0], [0], [1], [0, 0, 1, 1], [], []>} : vector<16x32xf32>, vector<32x32xf32>, vector<16x32xf32> -> vector<16x32xf32>
    %c0_26 = arith.constant 0 : index
    %c0_27 = arith.constant 0 : index
    %71 = vector.load %arg7[%c0_26, %c0_27] : memref<1x32xf32, #tpu.memory_space<vmem>>, vector<1x32xf32>
    %72 = vector.broadcast %71 : vector<1x32xf32> to vector<16x32xf32>
    %73 = arith.addf %70, %72 : vector<16x32xf32>
    %74 = vector.shape_cast %73 : vector<16x32xf32> to vector<2x8x32xf32>
    %c0_28 = arith.constant 0 : index
    %c0_29 = arith.constant 0 : index
    %c0_30 = arith.constant 0 : index
    %75 = vector.load %arg8[%c0_28, %c0_29, %c0_30] : memref<2x8x32xf32, #tpu.memory_space<vmem>>, vector<2x8x32xf32>
    tpu.vector_store %arg8[%c0_28, %c0_29, %c0_30], %74 {strides = array<i32>} : memref<2x8x32xf32, #tpu.memory_space<vmem>>, vector<2x8x32xf32>,
    return
  }
  func.func @transform_0(%arg0: i32) -> (i32, i32, i32) {
    %c0_i32 = arith.constant 0 : i32
    %c0_i32_0 = arith.constant 0 : i32
    %c0_i32_1 = arith.constant 0 : i32
    return %arg0, %c0_i32, %c0_i32_0 : i32, i32, i32
  }
  func.func @transform_1(%arg0: i32) -> (i32, i32) {
    %c0_i32 = arith.constant 0 : i32
    %c0_i32_0 = arith.constant 0 : i32
    %c0_i32_1 = arith.constant 0 : i32
    return %c0_i32, %c0_i32_0 : i32, i32
  }
  func.func @transform_2(%arg0: i32) -> (i32, i32) {
    %c0_i32 = arith.constant 0 : i32
    %c0_i32_0 = arith.constant 0 : i32
    %c0_i32_1 = arith.constant 0 : i32
    return %c0_i32, %c0_i32_0 : i32, i32
  }
  func.func @transform_3(%arg0: i32) -> (i32, i32) {
    %c0_i32 = arith.constant 0 : i32
    %c0_i32_0 = arith.constant 0 : i32
    %c0_i32_1 = arith.constant 0 : i32
    return %c0_i32, %c0_i32_0 : i32, i32
  }
  func.func @transform_4(%arg0: i32) -> (i32, i32) {
    %c0_i32 = arith.constant 0 : i32
    %c0_i32_0 = arith.constant 0 : i32
    %c0_i32_1 = arith.constant 0 : i32
    return %c0_i32, %c0_i32_0 : i32, i32
  }
  func.func @transform_5(%arg0: i32) -> (i32, i32) {
    %c0_i32 = arith.constant 0 : i32
    %c0_i32_0 = arith.constant 0 : i32
    %c0_i32_1 = arith.constant 0 : i32
    return %c0_i32, %c0_i32_0 : i32, i32
  }
  func.func @transform_6(%arg0: i32) -> (i32, i32) {
    %c0_i32 = arith.constant 0 : i32
    %c0_i32_0 = arith.constant 0 : i32
    %c0_i32_1 = arith.constant 0 : i32
    return %c0_i32, %c0_i32_0 : i32, i32
  }
  func.func @transform_7(%arg0: i32) -> (i32, i32, i32) {
    %c0_i32 = arith.constant 0 : i32
    %c0_i32_0 = arith.constant 0 : i32
    %c0_i32_1 = arith.constant 0 : i32
    return %arg0, %c0_i32, %c0_i32_0 : i32, i32, i32
  }
}

</mosaic_0001>

<bundles_post_ra>
// kernel: tpu_custom_call.1
= control target key start
LH: loop header
LB: loop body
LE: loop exit
PB: predicated region body
PF: predicated region fallthrough
CT: control target
= control target key end

     0   :  { %12 = vsyncpa [#allocation3], 0  ;;  %s4081_s0 = inlined_call_operand.hbm [shape: f32[2,8,32], index: 0, kind: input, shape index: {}]   ;;  %s4082_s1 = inlined_call_operand.hbm [shape: f32[32,32], index: 1, kind: input, shape index: {}]   ;;  %s4083_s2 = inlined_call_operand.hbm [shape: f32[32,32], index: 2, kind: input, shape index: {}]   ;;  %s4084_s3 = inlined_call_operand.hbm [shape: f32[32,32], index: 3, kind: input, shape index: {}]   ;;  %s4085_s4 = inlined_call_operand.hbm [shape: f32[32,32], index: 4, kind: input, shape index: {}]   ;;  %s4086_s5 = inlined_call_operand.hbm [shape: f32[32,32], index: 5, kind: input, shape index: {}]   ;;  %s4087_s6 = inlined_call_operand.vmem [shape: f32[1,32], index: 6, kind: input, shape index: {}]   ;;  %s4088_s7 = inlined_call_operand.hbm [shape: f32[2,8,32], index: 7, kind: output, shape index: {}]  }
   0x1   :  { %13 = vsyncpa [#allocation6], 0 }
   0x2   :  { %14 = vsyncpa [#allocation9], 0 }
   0x3   :  { %15 = vsyncpa [#allocation12], 0 }
   0x4   :  { %16 = vsyncpa [#allocation4], 0  ;;  %s3523_s24 = smov [#allocation5]   ;;  %s3524_s26 = smov [#allocation8]  }
   0x5   :  { %s34_s25 = sshll.u32 %s3523_s24, 4  ;;  %s58_s27 = sshll.u32 %s3524_s26, 4  ;;  %s35_s25 = int_to_ptr.vmem [resolvable:$true] %s34_s25  ;;  %s3581_s27 = int_to_ptr.vmem [resolvable:$true] %s58_s27 }
   0x6   :  { %s3359_s30 = scalar_lea.hbm %s4082_s1, 512 }
   0x7   :  { %p3360_p0 = scmp.ne.s32.totalorder %s4082_s1, %s3359_s30  ;;  %p3363_p1 = scmp.lt.u32.totalorder %s3359_s30, %s4082_s1 }
   0x9   :  { %p3365_p2 = pnand %p3363_p1, %p3360_p0 }
   0xb   :  { %3368 = shalt.err (!%p3365_p2)
}
   0xc   :  { %s3369_s12 = scalar_lea.vmem %s35_s25, 512  ;;  %p3374_p4 = scmp.lt.s32.totalorder %s35_s25, %s35_s25 }
   0xd   :  { %p3370_p3 = scmp.ne.s32.totalorder %s35_s25, %s3369_s12  ;;  %p3375_p5 = scmp.lt.s32.totalorder %s3369_s12, %s3369_s12 }
   0xf   :  { %p3376_p6 = por %p3375_p5, %p3374_p4 }
  0x11   :  { %p3377_p7 = pnand %p3376_p6, %p3370_p3 }
  0x13   :  { %3380 = shalt.err (!%p3377_p7)
}
  0x14   :  { %s3525_s13 = smov 128   ;;  %s3526_s14 = smov 8  }
  0x15   :  { %40 = dma.hbm_to_vmem [thread:$0]  %s4082_s1, 512, %s35_s25, [#allocation6], %s3525_s13, %s3525_s13, %s3526_s14  }
  0x16   :  { %s3381_s19 = scalar_lea.hbm %s4084_s3, 512 }
  0x17   :  { %p3382_p8 = scmp.ne.s32.totalorder %s4084_s3, %s3381_s19  ;;  %p3385_p9 = scmp.lt.u32.totalorder %s3381_s19, %s4084_s3 }
  0x19   :  { %p3387_p10 = pnand %p3385_p9, %p3382_p8 }
  0x1b   :  { %3390 = shalt.err (!%p3387_p10)
}
  0x1c   :  { %s3391_s24 = scalar_lea.vmem %s3581_s27, 512  ;;  %p3396_p12 = scmp.lt.s32.totalorder %s3581_s27, %s3581_s27 }
  0x1d   :  { %p3392_p11 = scmp.ne.s32.totalorder %s3581_s27, %s3391_s24  ;;  %p3397_p13 = scmp.lt.s32.totalorder %s3391_s24, %s3391_s24 }
  0x1f   :  { %p3398_p0 = por %p3397_p13, %p3396_p12 }
  0x21   :  { %p3399_p1 = pnand %p3398_p0, %p3392_p11 }
  0x23   :  { %3402 = shalt.err (!%p3399_p1)
}
  0x24   :  { %64 = dma.hbm_to_vmem [thread:$0]  %s4084_s3, 512, %s3581_s27, [#allocation9], %s3525_s13, %s3525_s13, %s3526_s14  }
  0x25   :  { %s3527_s26 = smov [#allocation2]   ;;  %s3528_s29 = smov [#allocation7]  }
  0x26   :  { %s22_s28 = sshll.u32 %s3527_s26, 4  ;;  %s46_s30 = sshll.u32 %s3528_s29, 4  ;;  %s23_s28 = int_to_ptr.vmem [resolvable:$true] %s22_s28  ;;  %s3618_s30 = int_to_ptr.vmem [resolvable:$true] %s46_s30 }
  0x27   :  { %s3403_s10 = scalar_lea.hbm %s4081_s0, 256 }
  0x28   :  { %p3404_p2 = scmp.ne.s32.totalorder %s4081_s0, %s3403_s10  ;;  %p3407_p3 = scmp.lt.u32.totalorder %s3403_s10, %s4081_s0 }
  0x2a   :  { %p3409_p4 = pnand %p3407_p3, %p3404_p2 }
  0x2c   :  { %3412 = shalt.err (!%p3409_p4)
}
  0x2d   :  { %s3413_s3 = scalar_lea.vmem %s23_s28, 256  ;;  %p3418_p6 = scmp.lt.s32.totalorder %s23_s28, %s23_s28 }
  0x2e   :  { %p3414_p5 = scmp.ne.s32.totalorder %s23_s28, %s3413_s3  ;;  %p3419_p7 = scmp.lt.s32.totalorder %s3413_s3, %s3413_s3 }
  0x30   :  { %p3420_p8 = por %p3419_p7, %p3418_p6 }
  0x32   :  { %p3421_p9 = pnand %p3420_p8, %p3414_p5 }
  0x34   :  { %3424 = shalt.err (!%p3421_p9)
}
  0x35   :  { %28 = dma.hbm_to_vmem [thread:$0]  %s4081_s0, 256, %s23_s28, [#allocation3], %s3525_s13, %s3525_s13, %s3526_s14  }
  0x36   :  { %s3425_s20 = scalar_lea.hbm %s4083_s2, 512 }
  0x37   :  { %p3426_p10 = scmp.ne.s32.totalorder %s4083_s2, %s3425_s20  ;;  %p3429_p11 = scmp.lt.u32.totalorder %s3425_s20, %s4083_s2 }
  0x39   :  { %p3431_p12 = pnand %p3429_p11, %p3426_p10 }
  0x3b   :  { %3434 = shalt.err (!%p3431_p12)
}
  0x3c   :  { %s3435_s1 = scalar_lea.vmem %s3618_s30, 512  ;;  %p3440_p0 = scmp.lt.s32.totalorder %s3618_s30, %s3618_s30 }
  0x3d   :  { %p3436_p13 = scmp.ne.s32.totalorder %s3618_s30, %s3435_s1  ;;  %p3441_p1 = scmp.lt.s32.totalorder %s3435_s1, %s3435_s1 }
  0x3f   :  { %p3442_p2 = por %p3441_p1, %p3440_p0 }
  0x41   :  { %p3443_p3 = pnand %p3442_p2, %p3436_p13 }
  0x43   :  { %3446 = shalt.err (!%p3443_p3)
}
  0x44   :  { %52 = dma.hbm_to_vmem [thread:$0]  %s4083_s2, 512, %s3618_s30, [#allocation6], %s3525_s13, %s3525_s13, %s3526_s14  }
  0x45   :  { %s3529_s26 = smov [#allocation10]   ;;  %s3530_s29 = smov [#allocation11]  }
  0x46   :  { %s70_s28 = sshll.u32 %s3529_s26, 4  ;;  %s82_s8 = sshll.u32 %s3530_s29, 4  ;;  %s71_s28 = int_to_ptr.vmem [resolvable:$true] %s70_s28  ;;  %s3655_s8 = int_to_ptr.vmem [resolvable:$true] %s82_s8 }
  0x47   :  { %s3447_s11 = scalar_lea.hbm %s4085_s4, 512 }
  0x48   :  { %p3448_p4 = scmp.ne.s32.totalorder %s4085_s4, %s3447_s11  ;;  %p3451_p5 = scmp.lt.u32.totalorder %s3447_s11, %s4085_s4 }
  0x4a   :  { %p3453_p6 = pnand %p3451_p5, %p3448_p4 }
  0x4c   :  { %3456 = shalt.err (!%p3453_p6)
}
  0x4d   :  { %s3457_s2 = scalar_lea.vmem %s71_s28, 512  ;;  %p3462_p8 = scmp.lt.s32.totalorder %s71_s28, %s71_s28 }
  0x4e   :  { %p3458_p7 = scmp.ne.s32.totalorder %s71_s28, %s3457_s2  ;;  %p3463_p9 = scmp.lt.s32.totalorder %s3457_s2, %s3457_s2 }
  0x50   :  { %p3464_p10 = por %p3463_p9, %p3462_p8 }
  0x52   :  { %p3465_p11 = pnand %p3464_p10, %p3458_p7 }
  0x54   :  { %3468 = shalt.err (!%p3465_p11)
}
  0x55   :  { %76 = dma.hbm_to_vmem [thread:$0]  %s4085_s4, 512, %s71_s28, [#allocation9], %s3525_s13, %s3525_s13, %s3526_s14  }
  0x56   :  { %s3469_s19 = scalar_lea.hbm %s4086_s5, 512 }
  0x57   :  { %p3470_p12 = scmp.ne.s32.totalorder %s4086_s5, %s3469_s19  ;;  %p3473_p13 = scmp.lt.u32.totalorder %s3469_s19, %s4086_s5 }
  0x59   :  { %p3475_p0 = pnand %p3473_p13, %p3470_p12 }
  0x5b   :  { %3478 = shalt.err (!%p3475_p0)
}
  0x5c   :  { %s3479_s24 = scalar_lea.vmem %s3655_s8, 512  ;;  %p3484_p2 = scmp.lt.s32.totalorder %s3655_s8, %s3655_s8 }
  0x5d   :  { %p3480_p1 = scmp.ne.s32.totalorder %s3655_s8, %s3479_s24  ;;  %p3485_p3 = scmp.lt.s32.totalorder %s3479_s24, %s3479_s24 }
  0x5f   :  { %p3486_p4 = por %p3485_p3, %p3484_p2 }
  0x61   :  { %p3487_p5 = pnand %p3486_p4, %p3480_p1 }
  0x63   :  { %3490 = shalt.err (!%p3487_p5)
}
  0x64   :  { %88 = dma.hbm_to_vmem [thread:$0]  %s4086_s5, 512, %s3655_s8, [#allocation12], %s3525_s13, %s3525_s13, %s3526_s14  }
  0x65   :  { %3513 = dma.done.wait [#allocation3], 256  }
  0x66   :  { %3514 = vsyncadd [#allocation3], 4294967040 }
  0x67   :  { %3515 = dma.done.wait [#allocation6], 1024  }
  0x68   :  { %3516 = vsyncadd [#allocation6], 4294966272 }
  0x69   :  { %3517 = dma.done.wait [#allocation9], 1024  }
  0x6a   :  { %3518 = vsyncadd [#allocation9], 4294966272 }
  0x6b   :  { %3519 = dma.done.wait [#allocation12], 512  }
  0x6c   :  { %3520 = vsyncadd [#allocation12], 4294966784  ;;  %v197_v0 = vld [vmem:[#allocation7] sm:$0xff]  ;;  %v198_v1 = vld [vmem:[#allocation7 + $0x8] sm:$0xff]  ;;  %vm115_vm0 = vcmask 261120   ;;  %s3531_s5 = smov 104   ;;  %v355_v25 = vlaneseq }
  0x6d   :  { %v111_v2 = vld [vmem:[#allocation5] sm:$0xff]  ;;  %v3277_v3 = vpack.c.bf16 %v198_v1, %v197_v0  ;;  %v112_v4 = vld [vmem:[#allocation5 + $0x8] sm:$0xff]  ;;  %v199_v5 = vld [vmem:[#allocation7 + $0x10] sm:$0xff]  ;;  %s3532_s0 = smov 120   ;;  %s3533_s25 = smov 112   ;;  %v3534_v24 = vmov 0.0  }
  0x6e   :  { %v200_v6 = vld [vmem:[#allocation7 + $0x18] sm:$0xff]  ;;  %v3269_v7 = vpack.c.bf16 %v112_v4, %v111_v2  ;;  %v113_v9 = vld [vmem:[#allocation5 + $0x10] sm:$0xff]  ;;  %v276_v14 = vld [vmem:[#allocation8] sm:$0xff]  ;;  %vm3535_vm1 = vmmov 0   ;;  %v3536_v26 = vmov 1983009808  }
  0x6f   :  { %v3281_v8 = vpack.c.bf16 %v200_v6, %v199_v5  ;;  %v114_v10 = vld [vmem:[#allocation5 + $0x18] sm:$0xff]  ;;  %v109_v11 = vld [vmem:[#allocation2] sm:$0xff]  ;;  %3278 = vmatprep.subr.bf16.mxu1 %v3277_v3  ;;  %v277_v15 = vld [vmem:[#allocation8 + $0x8] sm:$0xff]  ;;  %v374_v27 = vunpack.c.l.s4 %v3536_v26  ;;  %v3537_v28 = vmov 1934713408   ;;  %v3715_v30 = vshrl.u32 %v355_v25, 7 }
  0x70   :  { %v3273_v12 = vpack.c.bf16 %v114_v10, %v113_v9  ;;  %3153 = vmatprep.mubr.msk.f32.mxu1 %vm115_vm0, %v109_v11  ;;  %3280 = vmatpush3.bf16.msra.mxu1 %v3277_v3  ;;  %v110_v13 = vld [vmem:[#allocation2 + $0x8] sm:$0xff]  ;;  %v3285_v16 = vpack.c.bf16 %v277_v15, %v276_v14  ;;  %v278_v17 = vld [vmem:[#allocation8 + $0x10] sm:$0xff]  ;;  %v406_v29 = vunpack.c.l.s4 %v3537_v28  ;;  %vm799_vm2 = vcmask 64512   ;;  %s3538_s26 = smov 16   ;;  %s3539_s28 = smov 24  }
  0x71   :  { %3270 = vmatprep.subr.bf16.mxu0 %v3269_v7  ;;  %3282 = vmatprep.subr.bf16.mxu1 %v3281_v8  ;;  %v279_v18 = vld [vmem:[#allocation8 + $0x18] sm:$0xff]  ;;  %v375_v31 = vunpack.c.0.s8 %v374_v27  ;;  %vm1589_vm4 = vcmask 130048   ;;  %vm1591_vm5 = vcmask 195584   ;;  %s3540_s9 = smov [#allocation13]  }
  0x72   :  { %3272 = vmatpush3.bf16.msra.mxu0 %v3269_v7  ;;  %3142 = vmatprep.mubr.msk.f32.mxu0 %vm115_vm0, %v109_v11  ;;  %v3289_v20 = vpack.c.bf16 %v279_v18, %v278_v17  ;;  %v407_v34 = vunpack.c.0.s8 %v406_v29  ;;  %s3006_s10 = sshll.u32 %s3540_s9, 4  ;;  %s3007_s10 = int_to_ptr.vmem [resolvable:$true] %s3006_s10 }
  0x73   :  { %3274 = vmatprep.subr.bf16.mxu0 %v3273_v12  ;;  %v3718_v35 = vsub.s32 %v375_v31, %v3715_v30  ;;  %s3491_s11 = scalar_lea.vmem %s3007_s10, 256  ;;  %p3496_p7 = scmp.lt.s32.totalorder %s3007_s10, %s3007_s10 }
  0x74   :  { %3284 = vmatpush3.bf16.msra.mxu1 %v3281_v8  ;;  %v3721_v42 = vsub.s32 %v407_v34, %v3715_v30  ;;  %p3492_p6 = scmp.ne.s32.totalorder %s3007_s10, %s3491_s11  ;;  %p3497_p8 = scmp.lt.s32.totalorder %s3491_s11, %s3491_s11 }
  0x75   :  { %3167 = vmatprep.subr.mxu1 %v3534_v24 }
  0x76   :  { %3276 = vmatpush3.bf16.msra.mxu0 %v3273_v12  ;;  %p3498_p9 = por %p3497_p8, %p3496_p7 }
  0x77   :  { %3154 = vmatmul.mubr.msk.f32.vlgmr.msra.gmra.mrb[0].mxu1 %vm115_vm0, %v110_v13  ;;  %3286 = vmatprep.subr.bf16.mxu0 %v3285_v16 }
  0x78   :  { %3169 = vmatprep.mubr.msk.f32.mxu1 %vm3535_vm1, %v3534_v24  ;;  %p3499_p10 = pnand %p3498_p9, %p3492_p6 }
  0x79   :  { %3143 = vmatmul.mubr.msk.f32.vlgmr.msra.gmra.mrb[0].mxu0 %vm115_vm0, %v110_v13 }
  0x7a   :  { %3164 = vmatprep.mubr.msk.f32.mxu0 %vm115_vm0, %v109_v11  ;;  %3288 = vmatpush3.bf16.msra.mxu0 %v3285_v16 }
  0x7b   :  { %3290 = vmatprep.subr.bf16.mxu0 %v3289_v20 }
  0x7e   :  { %3292 = vmatpush3.bf16.msra.mxu0 %v3289_v20 }
  0x7f   :  { %3177 = vmatprep.subr.mxu0 %v3534_v24 }
  0x81   :  { %3165 = vmatmul.mubr.msk.f32.vlgmr.msra.gmra.mrb[2].mxu0 %vm115_vm0, %v110_v13 }
  0x82   :  { %3179 = vmatprep.mubr.msk.f32.mxu0 %vm3535_vm1, %v3534_v24 }
 0x14a   :  { %v3697_v19 = vpop.f32.mrb[0].mxu1 }
 0x14b   :  { %v267_v21 = vpop.f32.mrb[1].mxu1 }
 0x14c   :  { %v3699_v22 = vpop.f32.mrb[0].mxu0  ;;  %514 = vrot.lane.b32.xlu1 %v267_v21, %s3531_s5  ;;  %508 = vrot.lane.b32.xlu0 %v267_v21, %s3532_s0 }
 0x14d   :  { %v188_v23 = vpop.f32.mrb[1].mxu0 }
 0x150   :  { %511 = vrot.lane.b32.xlu0 %v267_v21, %s3533_s25  ;;  %362 = vrot.lane.b32.xlu1 %v188_v23, %s3532_s0 }
 0x154   :  { %365 = vrot.lane.b32.xlu0 %v188_v23, %s3533_s25  ;;  %368 = vrot.lane.b32.xlu1 %v188_v23, %s3531_s5 }
 0x1be   :  { %v515_v32 = vpop.permute.xlu1 %514  ;;  %v509_v33 = vpop.permute.xlu0 %508 }
 0x1bf   :  { %v533_v36 = vcombine.low %v509_v33, %v515_v32  ;;  %v534_v37 = vcombine.high %v509_v33, %v515_v32 }
 0x1c1   :  { %v541_v43 = vrot.slane %v533_v36, %v3718_v35  ;;  %v548_v44 = vrot.slane %v534_v37, %v3718_v35 }
 0x1c2   :  { %v512_v38 = vpop.permute.xlu0 %511  ;;  %v363_v39 = vpop.permute.xlu1 %362 }
 0x1c3   :  { %v517_v40 = vcombine.low %v267_v21, %v512_v38  ;;  %v518_v41 = vcombine.high %v267_v21, %v512_v38 }
 0x1c5   :  { %v525_v45 = vrot.slane %v517_v40, %v3718_v35  ;;  %v532_v46 = vrot.slane %v518_v41, %v3718_v35 }
 0x1c6   :  { %v366_v47 = vpop.permute.xlu0 %365  ;;  %v369_v48 = vpop.permute.xlu1 %368 }
 0x1c7   :  { %v549_v49 = vcombine.low %v525_v45, %v541_v43  ;;  %v550_v50 = vcombine.high %v525_v45, %v541_v43  ;;  %v565_v51 = vcombine.low %v532_v46, %v548_v44  ;;  %v566_v52 = vcombine.high %v532_v46, %v548_v44 }
 0x1c8   :  { %v371_v53 = vcombine.low %v188_v23, %v366_v47  ;;  %v372_v54 = vcombine.high %v188_v23, %v366_v47  ;;  %v387_v55 = vcombine.low %v363_v39, %v369_v48  ;;  %v388_v56 = vcombine.high %v363_v39, %v369_v48 }
 0x1c9   :  { %v557_v57 = vrot.slane %v549_v49, %v3721_v42  ;;  %v564_v58 = vrot.slane %v550_v50, %v3721_v42  ;;  %v573_v59 = vrot.slane %v565_v51, %v3721_v42  ;;  %v580_v60 = vrot.slane %v566_v52, %v3721_v42 }
 0x1ca   :  { %v379_v61 = vrot.slane %v371_v53, %v3718_v35  ;;  %v386_v62 = vrot.slane %v372_v54, %v3718_v35  ;;  %v395_v63 = vrot.slane %v387_v55, %v3718_v35  ;;  %v402_v0 = vrot.slane %v388_v56, %v3718_v35  ;;  %v3775_v56 = vpop.f32.mrb[2].mxu0 }
 0x1cb   :  { %v585_v1 = vcombine.low %v557_v57, %v564_v58  ;;  %v3029_v2 = vcombine.high %v557_v57, %v564_v58  ;;  %v601_v3 = vcombine.low %v573_v59, %v580_v60  ;;  %v3030_v4 = vcombine.high %v573_v59, %v580_v60  ;;  %v346_v57 = vpop.f32.mrb[3].mxu0 }
 0x1cc   :  { %v403_v5 = vcombine.low %v379_v61, %v395_v63  ;;  %v404_v6 = vcombine.high %v379_v61, %v395_v63  ;;  %v419_v7 = vcombine.low %v386_v62, %v402_v0  ;;  %v420_v8 = vcombine.high %v386_v62, %v402_v0 }
 0x1cd   :  { %v592_v9 = vrot.slane %v585_v1, %v3718_v35  ;;  %v600_v10 = vrot.slane %v3029_v2, %v3718_v35  ;;  %v608_v11 = vrot.slane %v601_v3, %v3718_v35  ;;  %v616_v12 = vrot.slane %v3030_v4, %v3718_v35 }
 0x1ce   :  { %v411_v13 = vrot.slane %v403_v5, %v3721_v42  ;;  %v418_v14 = vrot.slane %v404_v6, %v3721_v42  ;;  %v427_v15 = vrot.slane %v419_v7, %v3721_v42  ;;  %v434_v16 = vrot.slane %v420_v8, %v3721_v42 }
 0x1cf   :  { %v617_v17 = vcombine.low %v592_v9, %v600_v10  ;;  %v618_v18 = vcombine.high %v592_v9, %v600_v10  ;;  %v633_v20 = vcombine.low %v608_v11, %v616_v12  ;;  %v634_v21 = vcombine.high %v608_v11, %v616_v12 }
 0x1d0   :  { %v439_v23 = vcombine.low %v411_v13, %v418_v14  ;;  %v3027_v26 = vcombine.high %v411_v13, %v418_v14  ;;  %v455_v27 = vcombine.low %v427_v15, %v434_v16  ;;  %v3028_v28 = vcombine.high %v427_v15, %v434_v16 }
 0x1d1   :  { %v625_v29 = vrot.slane %v617_v17, %v3721_v42  ;;  %v641_v31 = vrot.slane %v633_v20, %v3721_v42  ;;  %v632_v32 = vrot.slane %v618_v18, %v3721_v42  ;;  %v648_v33 = vrot.slane %v634_v21, %v3721_v42 }
 0x1d2   :  { %v446_v34 = vrot.slane %v439_v23, %v3718_v35  ;;  %v454_v36 = vrot.slane %v3027_v26, %v3718_v35  ;;  %v462_v37 = vrot.slane %v455_v27, %v3718_v35  ;;  %v470_v38 = vrot.slane %v3028_v28, %v3718_v35 }
 0x1d3   :  { %v649_v39 = vcombine.low %v625_v29, %v641_v31  ;;  %v651_v40 = vcombine.low %v632_v32, %v648_v33  ;;  %v650_v52 = vcombine.high %v625_v29, %v641_v31  ;;  %v652_v54 = vcombine.high %v632_v32, %v648_v33 }
 0x1d4   :  { %v471_v41 = vcombine.low %v446_v34, %v454_v36  ;;  %v472_v43 = vcombine.high %v446_v34, %v454_v36  ;;  %v487_v44 = vcombine.low %v462_v37, %v470_v38  ;;  %v488_v45 = vcombine.high %v462_v37, %v470_v38 }
 0x1d5   :  { %3168 = vmatpush3.xpose.msk.msra.mxu1 %vm799_vm2, %v649_v39  ;;  %3178 = vmatpush3.xpose.msk.msra.mxu0 %vm799_vm2, %v651_v40  ;;  %v358_v58 = vand.u32 127, %v355_v25 }
 0x1d6   :  { %3172 = vmatprep.subr.mxu1 %v3534_v24  ;;  %v479_v46 = vrot.slane %v471_v41, %v3721_v42  ;;  %v495_v47 = vrot.slane %v487_v44, %v3721_v42  ;;  %v486_v48 = vrot.slane %v472_v43, %v3721_v42  ;;  %v502_v49 = vrot.slane %v488_v45, %v3721_v42 }
 0x1d7   :  { %3187 = vmatprep.subr.mxu0 %v3534_v24  ;;  %vm359_vm3 = vcmp.gt.s32.totalorder %v358_v58, %v3715_v30 }
 0x1d8   :  { %v503_v50 = vcombine.low %v479_v46, %v495_v47  ;;  %v505_v51 = vcombine.low %v486_v48, %v502_v49  ;;  %v504_v53 = vcombine.high %v479_v46, %v495_v47  ;;  %v506_v55 = vcombine.high %v486_v48, %v502_v49 }
 0x1d9   :  { %v3780_v59 = vsel %vm359_vm3, -1e+30, %v3534_v24 }
 0x1da   :  { %3170 = vmatmul.mubr.msk.f32.vlgmr.msra.gmra.mrb[2].mxu1 %vm799_vm2, %v503_v50  ;;  %3180 = vmatmul.mubr.msk.f32.vlgmr.msra.gmra.mrb[4].mxu0 %vm799_vm2, %v505_v51 }
 0x1db   :  { %3173 = vmatpush3.xpose.msk.msra.mxu1 %vm799_vm2, %v650_v52  ;;  %3174 = vmatprep.mubr.msk.f32.mxu1 %vm3535_vm1, %v3534_v24 }
 0x1dc   :  { %3182 = vmatprep.subr.mxu1 %v3534_v24  ;;  %3189 = vmatprep.mubr.msk.f32.mxu0 %vm3535_vm1, %v3534_v24 }
 0x1de   :  { %3175 = vmatmul.mubr.msk.f32.vlgmr.msra.gmra.mrb[4].mxu1 %vm799_vm2, %v504_v53 }
 0x1df   :  { %3183 = vmatpush3.xpose.msk.msra.mxu1 %vm799_vm2, %v652_v54  ;;  %3184 = vmatprep.mubr.msk.f32.mxu1 %vm3535_vm1, %v3534_v24 }
 0x1e0   :  { %3192 = vmatprep.subr.mxu1 %v3534_v24 }
 0x1e2   :  { %3185 = vmatmul.mubr.msk.f32.vlgmr.msra.gmra.mrb[6].mxu1 %vm799_vm2, %v506_v55 }
 0x1e3   :  { %3194 = vmatprep.mubr.msk.f32.mxu1 %vm3535_vm1, %v3534_v24 }
 0x2ad   :  { %v872_v60 = vpop.f32.mrb[2].mxu1  ;;  %v1024_v61 = vpop.f32.mrb[4].mxu0 }
 0x2ae   :  { %v873_v62 = vadd.f32 %v872_v60, %v3780_v59  ;;  %v3171_v63 = vpop.f32.mrb[3].mxu1  ;;  %v3181_v0 = vpop.f32.mrb[5].mxu0  ;;  %v1025_v1 = vadd.f32 %v1024_v61, %v3780_v59 }
 0x2b0   :  { %v1104_v2 = vsel %vm799_vm2, %v873_v62, -inf  ;;  %v1110_v5 = vsel %vm799_vm2, %v1025_v1, -inf }
 0x2b1   :  { %1105 = vmax.xlane.f32.xlu0 %v1104_v2  ;;  %v948_v3 = vpop.f32.mrb[4].mxu1 }
 0x2b2   :  { %v949_v4 = vadd.f32 %v948_v3, %v3780_v59  ;;  %v3176_v25 = vpop.f32.mrb[5].mxu1 }
 0x2b4   :  { %v1107_v30 = vsel %vm799_vm2, %v949_v4, -inf }
 0x2b5   :  { %1108 = vmax.xlane.f32.xlu1 %v1107_v30  ;;  %v1100_v6 = vpop.f32.mrb[6].mxu1  ;;  %1111 = vmax.xlane.f32.xlu0 %v1110_v5 }
 0x2b6   :  { %v1101_v7 = vadd.f32 %v1100_v6, %v3780_v59  ;;  %v3186_v8 = vpop.f32.mrb[7].mxu1 }
 0x2b8   :  { %v1113_v9 = vsel %vm799_vm2, %v1101_v7, -inf }
 0x2b9   :  { %1114 = vmax.xlane.f32.xlu0 %v1113_v9 }
 0x2c6   :  { %654 = vrot.lane.b32.xlu1 %v346_v57, %s3532_s0 }
 0x2ca   :  { %660 = vrot.lane.b32.xlu1 %v346_v57, %s3531_s5 }
 0x2ce   :  { %1740 = vrot.lane.b32.xlu1 %v3697_v19, %s3532_s0 }
 0x2cf   :  { %657 = vrot.lane.b32.xlu0 %v346_v57, %s3533_s25 }
 0x2d2   :  { %1746 = vrot.lane.b32.xlu1 %v3697_v19, %s3531_s5 }
 0x2d3   :  { %1743 = vrot.lane.b32.xlu0 %v3697_v19, %s3533_s25 }
 0x2d7   :  { %1594 = vrot.lane.b32.xlu0 %v3699_v22, %s3532_s0 }
 0x33e   :  { %v1106_v10 = vpop.xlane.xlu0 %1105 }
 0x33f   :  { %v1116_v11 = vsub.f32 %v873_v62, %v1106_v10 }
 0x341   :  { %v1120_v12 = vmul.f32 1.442695, %v1116_v11 }
 0x342   :  { %v1109_v13 = vpop.xlane.xlu1 %1108  ;;  %v1112_v14 = vpop.xlane.xlu0 %1111 }
 0x343   :  { %3327 = vpow2.f32 %v1120_v12  ;;  %v1117_v15 = vsub.f32 %v949_v4, %v1109_v13  ;;  %v1118_v16 = vsub.f32 %v1025_v1, %v1112_v14 }
 0x345   :  { %v1122_v17 = vmul.f32 1.442695, %v1117_v15  ;;  %v1124_v18 = vmul.f32 1.442695, %v1118_v16 }
 0x346   :  { %v655_v20 = vpop.permute.xlu1 %654  ;;  %v1115_v21 = vpop.xlane.xlu0 %1114 }
 0x347   :  { %3329 = vpow2.f32 %v1122_v17  ;;  %v1119_v23 = vsub.f32 %v1101_v7, %v1115_v21 }
 0x348   :  { %3331 = vpow2.f32 %v1124_v18 }
 0x349   :  { %v1126_v26 = vmul.f32 1.442695, %v1119_v23 }
 0x34a   :  { %v661_v27 = vpop.permute.xlu1 %660  ;;  %v658_v28 = vpop.permute.xlu0 %657 }
 0x34b   :  { %3333 = vpow2.f32 %v1126_v26  ;;  %v679_v29 = vcombine.low %v655_v20, %v661_v27  ;;  %v680_v31 = vcombine.high %v655_v20, %v661_v27  ;;  %v663_v32 = vcombine.low %v346_v57, %v658_v28 }
 0x34c   :  { %v664_v33 = vcombine.high %v346_v57, %v658_v28 }
 0x34d   :  { %v3801_v34 = vpop.eup %3327  ;;  %v687_v36 = vrot.slane %v679_v29, %v3718_v35  ;;  %v694_v37 = vrot.slane %v680_v31, %v3718_v35  ;;  %v671_v38 = vrot.slane %v663_v32, %v3718_v35 }
 0x34e   :  { %v678_v39 = vrot.slane %v664_v33, %v3718_v35  ;;  %v1128_v40 = vsel %vm799_vm2, %v3801_v34, 0.0  ;;  %v1741_v12 = vpop.permute.xlu1 %1740  ;;  %v1744_v14 = vpop.permute.xlu0 %1743 }
 0x34f   :  { %v695_v41 = vcombine.low %v671_v38, %v687_v36  ;;  %v696_v43 = vcombine.high %v671_v38, %v687_v36  ;;  %1129 = vadd.xlane.f32.xlu1 %v1128_v40  ;;  %v1749_v17 = vcombine.low %v3697_v19, %v1744_v14  ;;  %v1750_v18 = vcombine.high %v3697_v19, %v1744_v14 }
 0x350   :  { %v711_v44 = vcombine.low %v678_v39, %v694_v37  ;;  %v712_v45 = vcombine.high %v678_v39, %v694_v37 }
 0x351   :  { %v3809_v46 = vpop.eup %3329  ;;  %v703_v47 = vrot.slane %v695_v41, %v3721_v42  ;;  %v710_v48 = vrot.slane %v696_v43, %v3721_v42  ;;  %v1757_v23 = vrot.slane %v1749_v17, %v3718_v35  ;;  %v1764_v26 = vrot.slane %v1750_v18, %v3718_v35 }
 0x352   :  { %v3813_v49 = vpop.eup %3331  ;;  %v719_v50 = vrot.slane %v711_v44, %v3721_v42  ;;  %v726_v51 = vrot.slane %v712_v45, %v3721_v42  ;;  %v1131_v52 = vsel %vm799_vm2, %v3809_v46, 0.0  ;;  %v1747_v13 = vpop.permute.xlu1 %1746 }
 0x353   :  { %v731_v53 = vcombine.low %v703_v47, %v710_v48  ;;  %v3031_v54 = vcombine.high %v703_v47, %v710_v48  ;;  %1132 = vadd.xlane.f32.xlu0 %v1131_v52  ;;  %v1134_v58 = vsel %vm799_vm2, %v3813_v49, 0.0  ;;  %v1765_v15 = vcombine.low %v1741_v12, %v1747_v13  ;;  %v1595_v37 = vpop.permute.xlu0 %1594 }
 0x354   :  { %v747_v55 = vcombine.low %v719_v50, %v726_v51  ;;  %v3032_v57 = vcombine.high %v719_v50, %v726_v51  ;;  %1135 = vadd.xlane.f32.xlu1 %v1134_v58  ;;  %v1766_v16 = vcombine.high %v1741_v12, %v1747_v13 }
 0x355   :  { %v3821_v60 = vpop.eup %3333  ;;  %v738_v61 = vrot.slane %v731_v53, %v3718_v35  ;;  %v746_v62 = vrot.slane %v3031_v54, %v3718_v35  ;;  %v1773_v20 = vrot.slane %v1765_v15, %v3718_v35 }
 0x356   :  { %v754_v63 = vrot.slane %v747_v55, %v3718_v35  ;;  %v762_v0 = vrot.slane %v3032_v57, %v3718_v35  ;;  %v1137_v1 = vsel %vm799_vm2, %v3821_v60, 0.0  ;;  %v1780_v21 = vrot.slane %v1766_v16, %v3718_v35 }
 0x357   :  { %1138 = vadd.xlane.f32.xlu0 %v1137_v1  ;;  %v763_v2 = vcombine.low %v738_v61, %v746_v62  ;;  %v764_v4 = vcombine.high %v738_v61, %v746_v62  ;;  %v1781_v27 = vcombine.low %v1757_v23, %v1773_v20  ;;  %v1782_v28 = vcombine.high %v1757_v23, %v1773_v20 }
 0x358   :  { %v779_v3 = vcombine.low %v754_v63, %v762_v0  ;;  %v780_v25 = vcombine.high %v754_v63, %v762_v0  ;;  %v1797_v29 = vcombine.low %v1764_v26, %v1780_v21  ;;  %v1798_v31 = vcombine.high %v1764_v26, %v1780_v21 }
 0x359   :  { %v771_v30 = vrot.slane %v763_v2, %v3721_v42  ;;  %v3832_v6 = vrot.slane %v764_v4, %v3721_v42  ;;  %v1789_v32 = vrot.slane %v1781_v27, %v3721_v42  ;;  %v1796_v33 = vrot.slane %v1782_v28, %v3721_v42 }
 0x35a   :  { %v787_v5 = vrot.slane %v779_v3, %v3721_v42  ;;  %v3835_v7 = vrot.slane %v780_v25, %v3721_v42  ;;  %v1805_v36 = vrot.slane %v1797_v29, %v3721_v42  ;;  %v1812_v19 = vrot.slane %v1798_v31, %v3721_v42 }
 0x35b   :  { %v1817_v39 = vcombine.low %v1789_v32, %v1796_v33  ;;  %v3049_v40 = vcombine.high %v1789_v32, %v1796_v33 }
 0x35c   :  { %v795_v8 = vcombine.low %v771_v30, %v787_v5  ;;  %v796_v9 = vcombine.high %v771_v30, %v787_v5  ;;  %v797_v10 = vcombine.low %v3832_v6, %v3835_v7  ;;  %v798_v11 = vcombine.high %v3832_v6, %v3835_v7 }
 0x35d   :  { %v1833_v41 = vcombine.low %v1805_v36, %v1812_v19  ;;  %v3050_v43 = vcombine.high %v1805_v36, %v1812_v19  ;;  %v3858_v47 = vrot.slane %v1817_v39, %v3718_v35  ;;  %v3861_v48 = vrot.slane %v3049_v40, %v3718_v35 }
 0x35e   :  { %3188 = vmatpush3.msra.mxu0 %v795_v8  ;;  %3193 = vmatpush3.msra.mxu1 %v796_v9 }
 0x35f   :  { %3197 = vmatprep.subr.mxu0 %v3534_v24  ;;  %3202 = vmatprep.subr.mxu1 %v3534_v24  ;;  %v3864_v50 = vrot.slane %v1833_v41, %v3718_v35  ;;  %v3867_v51 = vrot.slane %v3050_v43, %v3718_v35  ;;  %v1849_v58 = vcombine.low %v3858_v47, %v3861_v48 }
 0x360   :  { %v1850_v28 = vcombine.high %v3858_v47, %v3861_v48 }
 0x361   :  { %v1865_v61 = vcombine.low %v3864_v50, %v3867_v51  ;;  %v1857_v30 = vrot.slane %v1849_v58, %v3721_v42  ;;  %v1866_v6 = vcombine.high %v3864_v50, %v3867_v51 }
 0x363   :  { %v1873_v5 = vrot.slane %v1865_v61, %v3721_v42 }
 0x365   :  { %1597 = vrot.lane.b32.xlu1 %v3699_v22, %s3533_s25  ;;  %v1882_v31 = vcombine.high %v1857_v30, %v1873_v5 }
 0x36d   :  { %1600 = vrot.lane.b32.xlu0 %v3699_v22, %s3531_s5 }
 0x3dc   :  { %v1130_v38 = vpop.xlane.xlu1 %1129 }
 0x3dd   :  { %3335 = vrcp.f32 %v1130_v38  ;;  %v1880_v38 = vrot.slane %v1866_v6, %v3721_v42 }
 0x3e0   :  { %v1133_v44 = vpop.xlane.xlu0 %1132 }
 0x3e1   :  { %3337 = vrcp.f32 %v1133_v44  ;;  %v1136_v45 = vpop.xlane.xlu1 %1135 }
 0x3e2   :  { %3339 = vrcp.f32 %v1136_v45 }
 0x3e4   :  { %v1139_v52 = vpop.xlane.xlu0 %1138 }
 0x3e5   :  { %3341 = vrcp.f32 %v1139_v52  ;;  %v1598_v53 = vpop.permute.xlu1 %1597 }
 0x3e6   :  { %v1603_v55 = vcombine.low %v3699_v22, %v1598_v53  ;;  %v1604_v57 = vcombine.high %v3699_v22, %v1598_v53 }
 0x3e7   :  { %v3336_v54 = vpop.eup %3335 }
 0x3e8   :  { %v1144_v62 = vmul.f32 %v3336_v54, %v3801_v34  ;;  %v1601_v63 = vpop.permute.xlu0 %1600  ;;  %v1611_v2 = vrot.slane %v1603_v55, %v3718_v35  ;;  %v1618_v4 = vrot.slane %v1604_v57, %v3718_v35 }
 0x3e9   :  { %v1619_v0 = vcombine.low %v1595_v37, %v1601_v63  ;;  %v1620_v1 = vcombine.high %v1595_v37, %v1601_v63  ;;  %v1864_v37 = vrot.slane %v1850_v28, %v3721_v42 }
 0x3ea   :  { %3190 = vmatmul.mubr.msk.f32.vlgmr.msra.gmra.mrb[6].mxu0 %vm799_vm2, %v1144_v62 }
 0x3eb   :  { %v3338_v3 = vpop.eup %3337  ;;  %v1627_v22 = vrot.slane %v1619_v0, %v3718_v35  ;;  %v1634_v25 = vrot.slane %v1620_v1, %v3718_v35  ;;  %3198 = vmatpush3.msra.mxu0 %v797_v10  ;;  %3199 = vmatprep.mubr.msk.f32.mxu0 %vm3535_vm1, %v3534_v24  ;;  %v1883_v47 = vcombine.low %v1864_v37, %v1880_v38 }
 0x3ec   :  { %v1145_v34 = vmul.f32 %v3338_v3, %v3809_v46  ;;  %3207 = vmatprep.subr.mxu0 %v3534_v24  ;;  %v3340_v8 = vpop.eup %3339  ;;  %v1884_v48 = vcombine.high %v1864_v37, %v1880_v38 }
 0x3ed   :  { %v1635_v9 = vcombine.low %v1611_v2, %v1627_v22  ;;  %v1636_v12 = vcombine.high %v1611_v2, %v1627_v22  ;;  %v1651_v13 = vcombine.low %v1618_v4, %v1634_v25  ;;  %v1652_v14 = vcombine.high %v1618_v4, %v1634_v25 }
 0x3ee   :  { %v1146_v15 = vmul.f32 %v3340_v8, %v3813_v49  ;;  %3195 = vmatmul.mubr.msk.f32.vlgmr.msra.gmra.mrb[8].mxu1 %vm799_vm2, %v1145_v34  ;;  %v1881_v49 = vcombine.low %v1857_v30, %v1873_v5 }
 0x3ef   :  { %v3342_v10 = vpop.eup %3341  ;;  %v1643_v16 = vrot.slane %v1635_v9, %v3721_v42  ;;  %v1650_v46 = vrot.slane %v1636_v12, %v3721_v42  ;;  %v1659_v17 = vrot.slane %v1651_v13, %v3721_v42  ;;  %v1666_v18 = vrot.slane %v1652_v14, %v3721_v42  ;;  %3203 = vmatpush3.msra.mxu1 %v798_v11 }
 0x3f0   :  { %v1147_v20 = vmul.f32 %v3342_v10, %v3821_v60  ;;  %3200 = vmatmul.mubr.msk.f32.vlgmr.msra.gmra.mrb[8].mxu0 %vm799_vm2, %v1146_v15  ;;  %3204 = vmatprep.mubr.msk.f32.mxu1 %vm3535_vm1, %v3534_v24 }
 0x3f1   :  { %v1671_v21 = vcombine.low %v1643_v16, %v1650_v46  ;;  %v3047_v23 = vcombine.high %v1643_v16, %v1650_v46  ;;  %v1687_v26 = vcombine.low %v1659_v17, %v1666_v18  ;;  %v3048_v27 = vcombine.high %v1659_v17, %v1666_v18  ;;  %3212 = vmatprep.subr.mxu1 %v3534_v24 }
 0x3f2   :  { %3208 = vmatpush3.xpose.msk.msra.mxu0 %vm799_vm2, %v1881_v49  ;;  %3205 = vmatmul.mubr.msk.f32.vlgmr.msra.gmra.mrb[10].mxu1 %vm799_vm2, %v1147_v20 }
 0x3f3   :  { %v1678_v60 = vrot.slane %v1671_v21, %v3718_v35  ;;  %v1686_v7 = vrot.slane %v3047_v23, %v3718_v35  ;;  %v1694_v11 = vrot.slane %v1687_v26, %v3718_v35  ;;  %v1702_v29 = vrot.slane %v3048_v27, %v3718_v35  ;;  %3209 = vmatprep.mubr.msk.f32.mxu0 %vm3535_vm1, %v3534_v24 }
 0x3f4   :  { %3214 = vmatprep.mubr.msk.f32.mxu1 %vm3535_vm1, %v3534_v24  ;;  %3217 = vmatprep.subr.mxu0 %v3534_v24 }
 0x3f5   :  { %v1703_v32 = vcombine.low %v1678_v60, %v1686_v7  ;;  %v1704_v33 = vcombine.high %v1678_v60, %v1686_v7  ;;  %v1719_v36 = vcombine.low %v1694_v11, %v1702_v29  ;;  %v1720_v19 = vcombine.high %v1694_v11, %v1702_v29 }
 0x3f6   :  { %3213 = vmatpush3.xpose.msk.msra.mxu1 %vm799_vm2, %v1882_v31 }
 0x3f7   :  { %3222 = vmatprep.subr.mxu1 %v3534_v24  ;;  %v1711_v39 = vrot.slane %v1703_v32, %v3721_v42  ;;  %v1727_v40 = vrot.slane %v1719_v36, %v3721_v42  ;;  %v1718_v44 = vrot.slane %v1704_v33, %v3721_v42  ;;  %v1734_v45 = vrot.slane %v1720_v19, %v3721_v42 }
 0x3f9   :  { %v1735_v41 = vcombine.low %v1711_v39, %v1727_v40  ;;  %v1736_v43 = vcombine.high %v1711_v39, %v1727_v40  ;;  %v1737_v50 = vcombine.low %v1718_v44, %v1734_v45  ;;  %v1738_v51 = vcombine.high %v1718_v44, %v1734_v45 }
 0x3fb   :  { %3210 = vmatmul.mubr.msk.f32.vlgmr.msra.gmra.mrb[10].mxu0 %vm799_vm2, %v1735_v41  ;;  %3215 = vmatmul.mubr.msk.f32.vlgmr.msra.gmra.mrb[12].mxu1 %vm799_vm2, %v1736_v43 }
 0x3fc   :  { %3218 = vmatpush3.xpose.msk.msra.mxu0 %vm799_vm2, %v1883_v47  ;;  %3223 = vmatpush3.xpose.msk.msra.mxu1 %vm799_vm2, %v1884_v48 }
 0x3fd   :  { %3219 = vmatprep.mubr.msk.f32.mxu0 %vm3535_vm1, %v3534_v24  ;;  %3224 = vmatprep.mubr.msk.f32.mxu1 %vm3535_vm1, %v3534_v24 }
 0x3fe   :  { %3227 = vmatprep.subr.mxu0 %v3534_v24  ;;  %3232 = vmatprep.subr.mxu1 %v3534_v24 }
 0x3ff   :  { %3220 = vmatmul.mubr.msk.f32.vlgmr.msra.gmra.mrb[12].mxu0 %vm799_vm2, %v1737_v50  ;;  %3225 = vmatmul.mubr.msk.f32.vlgmr.msra.gmra.mrb[14].mxu1 %vm799_vm2, %v1738_v51 }
 0x400   :  { %3229 = vmatprep.mubr.msk.f32.mxu0 %vm3535_vm1, %v3534_v24  ;;  %3234 = vmatprep.mubr.msk.f32.mxu1 %vm3535_vm1, %v3534_v24 }
 0x4bd   :  { %v1217_v52 = vpop.f32.mrb[6].mxu0 }
 0x4be   :  { %v3191_v53 = vpop.f32.mrb[7].mxu0 }
 0x4c1   :  { %v1290_v54 = vpop.f32.mrb[8].mxu1 }
 0x4c2   :  { %v3196_v55 = vpop.f32.mrb[9].mxu1 }
 0x4c3   :  { %v1363_v57 = vpop.f32.mrb[8].mxu0 }
 0x4c4   :  { %v1440_v58 = vcombine.low %v1217_v52, %v1363_v57  ;;  %v1441_v61 = vcombine.high %v1217_v52, %v1363_v57  ;;  %v3201_v62 = vpop.f32.mrb[9].mxu0 }
 0x4c5   :  { %v1436_v63 = vpop.f32.mrb[10].mxu1 }
 0x4c6   :  { %v1456_v0 = vcombine.low %v1290_v54, %v1436_v63  ;;  %v1457_v1 = vcombine.high %v1290_v54, %v1436_v63  ;;  %v3206_v2 = vpop.f32.mrb[11].mxu1  ;;  %v1448_v3 = vrot.slane %v1440_v58, %v3718_v35  ;;  %v1455_v4 = vrot.slane %v1441_v61, %v3718_v35 }
 0x4c8   :  { %v1464_v22 = vrot.slane %v1456_v0, %v3718_v35  ;;  %v1471_v25 = vrot.slane %v1457_v1, %v3718_v35 }
 0x4ca   :  { %v1472_v34 = vcombine.low %v1448_v3, %v1464_v22  ;;  %v1473_v30 = vcombine.high %v1448_v3, %v1464_v22  ;;  %v1488_v5 = vcombine.low %v1455_v4, %v1471_v25  ;;  %v1489_v8 = vcombine.high %v1455_v4, %v1471_v25 }
 0x4cc   :  { %v1480_v9 = vrot.slane %v1472_v34, %v3721_v42  ;;  %v1487_v12 = vrot.slane %v1473_v30, %v3721_v42  ;;  %v1496_v13 = vrot.slane %v1488_v5, %v3721_v42  ;;  %v1503_v14 = vrot.slane %v1489_v8, %v3721_v42 }
 0x4ce   :  { %v2103_v15 = vpop.f32.mrb[10].mxu0  ;;  %v2179_v10 = vpop.f32.mrb[12].mxu1  ;;  %v1508_v16 = vcombine.low %v1480_v9, %v1487_v12  ;;  %v3045_v46 = vcombine.high %v1480_v9, %v1487_v12  ;;  %v1524_v17 = vcombine.low %v1496_v13, %v1503_v14  ;;  %v3046_v18 = vcombine.high %v1496_v13, %v1503_v14 }
 0x4cf   :  { %v2104_v20 = vadd.f32 %v2103_v15, %v3780_v59  ;;  %v2180_v49 = vadd.f32 %v2179_v10, %v3780_v59  ;;  %v3211_v21 = vpop.f32.mrb[11].mxu0  ;;  %v3216_v23 = vpop.f32.mrb[13].mxu1 }
 0x4d0   :  { %v1515_v26 = vrot.slane %v1508_v16, %v3718_v35  ;;  %v1523_v27 = vrot.slane %v3045_v46, %v3718_v35  ;;  %v1531_v28 = vrot.slane %v1524_v17, %v3718_v35  ;;  %v1539_v6 = vrot.slane %v3046_v18, %v3718_v35 }
 0x4d1   :  { %v2338_v60 = vsel %vm799_vm2, %v2180_v49, -inf  ;;  %v2335_v7 = vsel %vm799_vm2, %v2104_v20, -inf }
 0x4d2   :  { %2339 = vmax.xlane.f32.xlu0 %v2338_v60  ;;  %v2331_v11 = vpop.f32.mrb[14].mxu1  ;;  %2336 = vmax.xlane.f32.xlu1 %v2335_v7  ;;  %v2255_v29 = vpop.f32.mrb[12].mxu0  ;;  %v1540_v31 = vcombine.low %v1515_v26, %v1523_v27  ;;  %v1556_v32 = vcombine.low %v1531_v28, %v1539_v6  ;;  %v1541_v33 = vcombine.high %v1515_v26, %v1523_v27 }
 0x4d3   :  { %v2332_v36 = vadd.f32 %v2331_v11, %v3780_v59  ;;  %v2256_v19 = vadd.f32 %v2255_v29, %v3780_v59  ;;  %v3221_v37 = vpop.f32.mrb[13].mxu0  ;;  %v3226_v38 = vpop.f32.mrb[15].mxu1  ;;  %v1557_v39 = vcombine.high %v1531_v28, %v1539_v6 }
 0x4d4   :  { %v3959_v40 = vrot.slane %v1540_v31, %v3721_v42  ;;  %v3962_v41 = vrot.slane %v1556_v32, %v3721_v42  ;;  %v1555_v43 = vrot.slane %v1541_v33, %v3721_v42 }
 0x4d5   :  { %v2344_v44 = vsel %vm799_vm2, %v2332_v36, -inf  ;;  %v2341_v45 = vsel %vm799_vm2, %v2256_v19, -inf  ;;  %v1571_v47 = vrot.slane %v1557_v39, %v3721_v42 }
 0x4d6   :  { %2345 = vmax.xlane.f32.xlu1 %v2344_v44  ;;  %2342 = vmax.xlane.f32.xlu0 %v2341_v45  ;;  %v1572_v59 = vcombine.low %v3959_v40, %v3962_v41  ;;  %v1573_v48 = vcombine.high %v3959_v40, %v3962_v41  ;;  %v2822_v40 = vld [vmem:[#allocation10] sm:$0xff]  ;;  %v2823_v41 = vld [vmem:[#allocation10 + $0x8] sm:$0xff] }
 0x4d7   :  { %v1574_v50 = vcombine.low %v1555_v43, %v1571_v47  ;;  %v1575_v51 = vcombine.high %v1555_v43, %v1571_v47 }
 0x55f   :  { %v2340_v52 = vpop.xlane.xlu0 %2339  ;;  %v2337_v53 = vpop.xlane.xlu1 %2336 }
 0x560   :  { %v2348_v54 = vsub.f32 %v2180_v49, %v2340_v52  ;;  %v2347_v55 = vsub.f32 %v2104_v20, %v2337_v53 }
 0x562   :  { %v2353_v57 = vmul.f32 1.442695, %v2348_v54  ;;  %v2351_v58 = vmul.f32 1.442695, %v2347_v55 }
 0x563   :  { %v2343_v61 = vpop.xlane.xlu0 %2342  ;;  %v2346_v25 = vpop.xlane.xlu1 %2345 }
 0x564   :  { %3343 = vpow2.f32 %v2353_v57  ;;  %v2349_v62 = vsub.f32 %v2256_v19, %v2343_v61  ;;  %v2350_v34 = vsub.f32 %v2332_v36, %v2346_v25 }
 0x565   :  { %3345 = vpow2.f32 %v2351_v58 }
 0x566   :  { %v2355_v63 = vmul.f32 1.442695, %v2349_v62  ;;  %v2357_v30 = vmul.f32 1.442695, %v2350_v34 }
 0x568   :  { %3347 = vpow2.f32 %v2355_v63 }
 0x569   :  { %3349 = vpow2.f32 %v2357_v30 }
 0x56e   :  { %v3972_v0 = vpop.eup %3343 }
 0x56f   :  { %v3974_v1 = vpop.eup %3345  ;;  %v2362_v2 = vsel %vm799_vm2, %v3972_v0, 0.0 }
 0x570   :  { %2363 = vadd.xlane.f32.xlu1 %v2362_v2  ;;  %v2359_v3 = vsel %vm799_vm2, %v3974_v1, 0.0 }
 0x571   :  { %2360 = vadd.xlane.f32.xlu0 %v2359_v3 }
 0x572   :  { %v3980_v4 = vpop.eup %3347 }
 0x573   :  { %v2365_v22 = vsel %vm799_vm2, %v3980_v4, 0.0  ;;  %v3989_v5 = vpop.eup %3349 }
 0x574   :  { %v2368_v8 = vsel %vm799_vm2, %v3989_v5, 0.0 }
 0x575   :  { %2366 = vadd.xlane.f32.xlu0 %v2365_v22 }
 0x581   :  { %1889 = vrot.lane.b32.xlu1 %v3775_v56, %s3533_s25 }
 0x58b   :  { %1886 = vrot.lane.b32.xlu0 %v3775_v56, %s3532_s0 }
 0x58f   :  { %1577 = vrot.lane.b32.xlu0 %v1573_v48, %s3526_s14 }
 0x5a5   :  { %2369 = vadd.xlane.f32.xlu1 %v2368_v8 }
 0x5b6   :  { %1892 = vrot.lane.b32.xlu1 %v3775_v56, %s3531_s5 }
 0x5ba   :  { %1581 = vrot.lane.b32.xlu1 %v1574_v50, %s3538_s26 }
 0x5be   :  { %1585 = vrot.lane.b32.xlu1 %v1575_v51, %s3539_s28 }
 0x5fd   :  { %v2364_v9 = vpop.xlane.xlu1 %2363 }
 0x5fe   :  { %v2361_v12 = vpop.xlane.xlu0 %2360  ;;  %3351 = vrcp.f32 %v2364_v9 }
 0x5ff   :  { %3353 = vrcp.f32 %v2361_v12 }
 0x601   :  { %v1890_v13 = vpop.permute.xlu1 %1889 }
 0x602   :  { %v2367_v14 = vpop.xlane.xlu0 %2366  ;;  %v1895_v10 = vcombine.low %v3775_v56, %v1890_v13  ;;  %v1896_v16 = vcombine.high %v3775_v56, %v1890_v13 }
 0x603   :  { %3355 = vrcp.f32 %v2367_v14 }
 0x604   :  { %v1903_v49 = vrot.slane %v1895_v10, %v3718_v35  ;;  %v1910_v21 = vrot.slane %v1896_v16, %v3718_v35 }
 0x606   :  { %v1887_v46 = vpop.permute.xlu0 %1886 }
 0x608   :  { %v3352_v43 = vpop.eup %3351 }
 0x609   :  { %v3354_v50 = vpop.eup %3353  ;;  %v2376_v63 = vmul.f32 %v3352_v43, %v3972_v0 }
 0x60a   :  { %v2375_v2 = vmul.f32 %v3354_v50, %v3974_v1  ;;  %v1578_v3 = vpop.permute.xlu0 %1577 }
 0x60b   :  { %v1588_v1 = vsel %vm799_vm2, %v1572_v59, %v1578_v3  ;;  %v3293_v59 = vpack.c.bf16 %v2823_v41, %v2822_v40  ;;  %v3069_v40 = vld [vmem:[%s4087_s6] ss:$0 sm:$0xff] }
 0x60d   :  { %v3356_v54 = vpop.eup %3355 }
 0x60e   :  { %v2377_v0 = vmul.f32 %v3356_v54, %v3980_v4  ;;  %v2910_v54 = vld [vmem:[#allocation11 + $0x18] sm:$0xff] }
 0x632   :  { %v2370_v15 = vpop.xlane.xlu1 %2369 }
 0x633   :  { %3357 = vrcp.f32 %v2370_v15 }
 0x636   :  { %v1893_v17 = vpop.permute.xlu1 %1892 }
 0x637   :  { %v1911_v18 = vcombine.low %v1887_v46, %v1893_v17  ;;  %v1912_v20 = vcombine.high %v1887_v46, %v1893_v17 }
 0x639   :  { %v1919_v23 = vrot.slane %v1911_v18, %v3718_v35  ;;  %v1926_v26 = vrot.slane %v1912_v20, %v3718_v35 }
 0x63a   :  { %v1582_v51 = vpop.permute.xlu1 %1581 }
 0x63b   :  { %v1927_v27 = vcombine.low %v1903_v49, %v1919_v23  ;;  %v1928_v28 = vcombine.high %v1903_v49, %v1919_v23  ;;  %v1943_v6 = vcombine.low %v1910_v21, %v1926_v26  ;;  %v1944_v60 = vcombine.high %v1910_v21, %v1926_v26 }
 0x63c   :  { %v1590_v8 = vsel %vm1589_vm4, %v1588_v1, %v1582_v51 }
 0x63d   :  { %v1935_v56 = vrot.slane %v1927_v27, %v3721_v42  ;;  %v1942_v7 = vrot.slane %v1928_v28, %v3721_v42  ;;  %v1951_v11 = vrot.slane %v1943_v6, %v3721_v42  ;;  %v1958_v29 = vrot.slane %v1944_v60, %v3721_v42  ;;  %v3358_v62 = vpop.eup %3357  ;;  %v2824_v60 = vld [vmem:[#allocation10 + $0x10] sm:$0xff] }
 0x63e   :  { %v1586_v34 = vpop.permute.xlu1 %1585  ;;  %v2378_v30 = vmul.f32 %v3358_v62, %v3989_v5 }
 0x63f   :  { %v1963_v31 = vcombine.low %v1935_v56, %v1942_v7  ;;  %v3051_v32 = vcombine.high %v1935_v56, %v1942_v7  ;;  %v1979_v33 = vcombine.low %v1951_v11, %v1958_v29  ;;  %v3052_v36 = vcombine.high %v1951_v11, %v1958_v29  ;;  %v2825_v56 = vld [vmem:[#allocation10 + $0x18] sm:$0xff] }
 0x640   :  { %v1592_v9 = vsel %vm1591_vm5, %v1590_v8, %v1586_v34 }
 0x641   :  { %v1970_v19 = vrot.slane %v1963_v31, %v3718_v35  ;;  %v1978_v37 = vrot.slane %v3051_v32, %v3718_v35  ;;  %v1986_v38 = vrot.slane %v1979_v33, %v3718_v35  ;;  %v1994_v39 = vrot.slane %v3052_v36, %v3718_v35 }
 0x642   :  { %v3297_v32 = vpack.c.bf16 %v2825_v56, %v2824_v60 }
 0x643   :  { %v1995_v44 = vcombine.low %v1970_v19, %v1978_v37  ;;  %v2011_v45 = vcombine.low %v1986_v38, %v1994_v39  ;;  %v1996_v47 = vcombine.high %v1970_v19, %v1978_v37  ;;  %v2012_v48 = vcombine.high %v1986_v38, %v1994_v39 }
 0x645   :  { %v2003_v52 = vrot.slane %v1995_v44, %v3721_v42  ;;  %v2019_v53 = vrot.slane %v2011_v45, %v3721_v42  ;;  %v2010_v55 = vrot.slane %v1996_v47, %v3721_v42  ;;  %v2026_v57 = vrot.slane %v2012_v48, %v3721_v42  ;;  %v2907_v45 = vld [vmem:[#allocation11] sm:$0xff]  ;;  %v2908_v47 = vld [vmem:[#allocation11 + $0x8] sm:$0xff]  ;;  %v2909_v48 = vld [vmem:[#allocation11 + $0x10] sm:$0xff] }
 0x647   :  { %v2027_v58 = vcombine.low %v2003_v52, %v2019_v53  ;;  %v2028_v61 = vcombine.high %v2003_v52, %v2019_v53  ;;  %v2029_v22 = vcombine.low %v2010_v55, %v2026_v57  ;;  %v2030_v25 = vcombine.high %v2010_v55, %v2026_v57 }
 0x648   :  { %v3301_v55 = vpack.c.bf16 %v2908_v47, %v2907_v45  ;;  %v3305_v57 = vpack.c.bf16 %v2910_v54, %v2909_v48 }
 0x649   :  { %3228 = vmatpush3.msra.mxu0 %v2027_v58  ;;  %3233 = vmatpush3.msra.mxu1 %v2028_v61 }
 0x64a   :  { %3230 = vmatmul.mubr.msk.f32.vlgmr.msra.gmra.mrb[14].mxu0 %vm799_vm2, %v2375_v2  ;;  %3235 = vmatmul.mubr.msk.f32.vlgmr.msra.gmra.mrb[16].mxu1 %vm799_vm2, %v2376_v63 }
 0x64b   :  { %3237 = vmatprep.subr.mxu0 %v3534_v24  ;;  %3242 = vmatprep.subr.mxu1 %v3534_v24 }
 0x64c   :  { %3238 = vmatpush3.msra.mxu0 %v2029_v22  ;;  %3243 = vmatpush3.msra.mxu1 %v2030_v25 }
 0x64d   :  { %3239 = vmatprep.mubr.msk.f32.mxu0 %vm3535_vm1, %v3534_v24  ;;  %3244 = vmatprep.mubr.msk.f32.mxu1 %vm3535_vm1, %v3534_v24 }
 0x64e   :  { %3240 = vmatmul.mubr.msk.f32.vlgmr.msra.gmra.mrb[16].mxu0 %vm799_vm2, %v2377_v0  ;;  %3245 = vmatmul.mubr.msk.f32.vlgmr.msra.gmra.mrb[18].mxu1 %vm799_vm2, %v2378_v30 }
 0x64f   :  { %3255 = vmatprep.mubr.msk.f32.mxu0 %vm115_vm0, %v1592_v9  ;;  %3294 = vmatprep.subr.bf16.mxu0 %v3293_v59 }
 0x650   :  { %3296 = vmatpush3.bf16.msra.mxu0 %v3293_v59  ;;  %3302 = vmatprep.subr.bf16.mxu1 %v3301_v55 }
 0x651   :  { %3298 = vmatprep.subr.bf16.mxu0 %v3297_v32  ;;  %3304 = vmatpush3.bf16.msra.mxu1 %v3301_v55 }
 0x652   :  { %3306 = vmatprep.subr.bf16.mxu1 %v3305_v57 }
 0x654   :  { %3300 = vmatpush3.bf16.msra.mxu0 %v3297_v32 }
 0x655   :  { %3308 = vmatpush3.bf16.msra.mxu1 %v3305_v57 }
 0x71d   :  { %v2448_v4 = vpop.f32.mrb[14].mxu0  ;;  %v2521_v5 = vpop.f32.mrb[16].mxu1 }
 0x71e   :  { %v3231_v12 = vpop.f32.mrb[15].mxu0  ;;  %v3236_v13 = vpop.f32.mrb[17].mxu1 }
 0x721   :  { %v2594_v14 = vpop.f32.mrb[16].mxu0  ;;  %v2667_v15 = vpop.f32.mrb[18].mxu1 }
 0x722   :  { %v2671_v24 = vcombine.low %v2448_v4, %v2594_v14  ;;  %v2672_v10 = vcombine.high %v2448_v4, %v2594_v14  ;;  %v2687_v16 = vcombine.low %v2521_v5, %v2667_v15  ;;  %v2688_v46 = vcombine.high %v2521_v5, %v2667_v15  ;;  %v3241_v17 = vpop.f32.mrb[17].mxu0  ;;  %v3246_v18 = vpop.f32.mrb[19].mxu1 }
 0x724   :  { %v2679_v20 = vrot.slane %v2671_v24, %v3718_v35  ;;  %v2686_v49 = vrot.slane %v2672_v10, %v3718_v35  ;;  %v2695_v21 = vrot.slane %v2687_v16, %v3718_v35  ;;  %v2702_v23 = vrot.slane %v2688_v46, %v3718_v35 }
 0x726   :  { %v2703_v26 = vcombine.low %v2679_v20, %v2695_v21  ;;  %v2704_v27 = vcombine.high %v2679_v20, %v2695_v21  ;;  %v2719_v28 = vcombine.low %v2686_v49, %v2702_v23  ;;  %v2720_v6 = vcombine.high %v2686_v49, %v2702_v23 }
 0x728   :  { %v2711_v7 = vrot.slane %v2703_v26, %v3721_v42  ;;  %v2718_v11 = vrot.slane %v2704_v27, %v3721_v42  ;;  %v2727_v29 = vrot.slane %v2719_v28, %v3721_v42  ;;  %v2734_v31 = vrot.slane %v2720_v6, %v3721_v42 }
 0x72a   :  { %v2739_v33 = vcombine.low %v2711_v7, %v2718_v11  ;;  %v3065_v36 = vcombine.high %v2711_v7, %v2718_v11  ;;  %v2755_v19 = vcombine.low %v2727_v29, %v2734_v31  ;;  %v3066_v37 = vcombine.high %v2727_v29, %v2734_v31 }
 0x72c   :  { %v2746_v38 = vrot.slane %v2739_v33, %v3718_v35  ;;  %v2754_v39 = vrot.slane %v3065_v36, %v3718_v35  ;;  %v2762_v43 = vrot.slane %v2755_v19, %v3718_v35  ;;  %v2770_v44 = vrot.slane %v3066_v37, %v3718_v35 }
 0x72e   :  { %v2772_v50 = vcombine.high %v2746_v38, %v2754_v39  ;;  %v2788_v51 = vcombine.high %v2762_v43, %v2770_v44  ;;  %v2771_v52 = vcombine.low %v2746_v38, %v2754_v39  ;;  %v2787_v53 = vcombine.low %v2762_v43, %v2770_v44 }
 0x730   :  { %v2786_v58 = vrot.slane %v2772_v50, %v3721_v42  ;;  %v2802_v61 = vrot.slane %v2788_v51, %v3721_v42  ;;  %v2779_v62 = vrot.slane %v2771_v52, %v3721_v42  ;;  %v2795_v63 = vrot.slane %v2787_v53, %v3721_v42 }
 0x732   :  { %v2806_v35 = vcombine.high %v2786_v58, %v2802_v61  ;;  %v2804_v2 = vcombine.high %v2779_v62, %v2795_v63  ;;  %v2803_v3 = vcombine.low %v2779_v62, %v2795_v63  ;;  %v2805_v22 = vcombine.low %v2786_v58, %v2802_v61 }
 0x734   :  { %2816 = vrot.lane.b32.xlu1 %v2806_v35, %s3539_s28  ;;  %2808 = vrot.lane.b32.xlu0 %v2804_v2, %s3526_s14 }
 0x738   :  { %2812 = vrot.lane.b32.xlu0 %v2805_v22, %s3538_s26 }
 0x7a6   :  { %v2809_v25 = vpop.permute.xlu0 %2808  ;;  %v2817_v1 = vpop.permute.xlu1 %2816 }
 0x7a7   :  { %v2819_v34 = vsel %vm799_vm2, %v2803_v3, %v2809_v25 }
 0x7aa   :  { %v2813_v0 = vpop.permute.xlu0 %2812 }
 0x7ab   :  { %v2820_v42 = vsel %vm1589_vm4, %v2819_v34, %v2813_v0 }
 0x7ac   :  { %v2821_v30 = vsel %vm1591_vm5, %v2820_v42, %v2817_v1 }
 0x7ad   :  { %3256 = vmatmul.mubr.msk.f32.vlgmr.msra.gmra.mrb[18].mxu0 %vm115_vm0, %v2821_v30 }
 0x880   :  { %v3257_v8 = vpop.f32.mrb[18].mxu0 }
 0x881   :  { %v2898_v9 = vpop.f32.mrb[19].mxu0 }
 0x882   :  { %3266 = vmatprep.mubr.msk.f32.mxu1 %vm115_vm0, %v2898_v9 }
 0x883   :  { %3267 = vmatmul.mubr.msk.f32.vlgmr.msra.gmra.mrb[20].mxu1 %vm115_vm0, %v3257_v8 }
 0x956   :  { %v3268_v41 = vpop.f32.mrb[20].mxu1 }
 0x957   :  { %v2996_v59 = vadd.f32 %v3268_v41, %v3069_v40  ;;  %v2990_v4 = vpop.f32.mrb[21].mxu1 }
 0x958   :  { %v2991_v5 = vadd.f32 %v3069_v40, %v2990_v4 }
 0x959   :  { %3000 = vst.msk [vmem:[#allocation13 + $0x8] sm:$0xff] %vm115_vm0, %v2996_v59 }
 0x95a   :  { %2999 = vst.msk [vmem:[#allocation13] sm:$0xff] %vm115_vm0, %v2991_v5 }
 0x95b   :  { %3502 = shalt.err (!%p3499_p10)
}
 0x95c   :  { %s3503_s15 = scalar_lea.hbm %s4088_s7, 256 }
 0x95d   :  { %p3504_p11 = scmp.ne.s32.totalorder %s4088_s7, %s3503_s15  ;;  %p3507_p12 = scmp.lt.u32.totalorder %s3503_s15, %s4088_s7 }
 0x95f   :  { %p3509_p13 = pnand %p3507_p12, %p3504_p11 }
 0x961   :  { %3512 = shalt.err (!%p3509_p13)
}
 0x962   :  { %3012 = dma.vmem_to_hbm [thread:$0]  %s3007_s10, 256, %s4088_s7, [#allocation4], %s3525_s13, %s3525_s13, %s3526_s14  }
 0x963   :  { %3521 = dma.done.wait [#allocation4], 256  }
 0x964   :  { %3522 = vsyncadd [#allocation4], 4294967040 }
 0x965   :  { %3016 = vsyncpa [#allocation3], 1 }
 0x966   :  { %3017 = vsyncpa [#allocation6], 1 }
 0x967   :  { %3018 = vsyncpa [#allocation9], 1 }
 0x968   :  { %3019 = vsyncpa [#allocation12], 1 }
 0x969   :  { %3020 = vsyncpa [#allocation4], 1 }

</bundles_post_ra>
